<compile_context>
chip_gen: v7x
topology: tpu7x:2x2x1
jax: 0.10.0
libtpu: 0.0.40
codegen_flags: <defaults>
</compile_context>

<pallas_src>
import jax
import jax.numpy as jnp
from jax.experimental import pallas as pl
from jax.experimental.pallas import tpu as pltpu


def mlp_kernel(x_ref, w1_ref, b1_ref, w2_ref, b2_ref,
               w3_ref, b3_ref, w4_ref, b4_ref, o_ref):
    # 4 matmuls + 3 ReLUs on one (TB, 784) batch tile.
    # bf16 MXU inputs, f32 accumulation, f32 bias add, bf16 re-cast between layers.
    x = x_ref[...].astype(jnp.bfloat16)            # in-kernel cast, hidden under DMA
    h = jnp.dot(x, w1_ref[...], preferred_element_type=jnp.float32)
    h = jnp.maximum(h + b1_ref[...], 0.0).astype(jnp.bfloat16)

    h = jnp.dot(h, w2_ref[...], preferred_element_type=jnp.float32)
    h = jnp.maximum(h + b2_ref[...], 0.0).astype(jnp.bfloat16)

    h = jnp.dot(h, w3_ref[...], preferred_element_type=jnp.float32)
    h = jnp.maximum(h + b3_ref[...], 0.0).astype(jnp.bfloat16)

    logits = jnp.dot(h, w4_ref[...], preferred_element_type=jnp.float32)
    o_ref[...] = (logits + b4_ref[...]).astype(o_ref.dtype)


def _round_up(n, m):
    return ((n + m - 1) // m) * m


def _choose_tb(B, tb_cap):
    """Adaptive batch tile: big tiles to amortize per-step overhead, but keep
    >= 2 grid steps for larger batches (v7x megacore), and never over-pad."""
    min_steps = 2 if B >= 256 else 1
    steps = max(pl.cdiv(B, tb_cap), min_steps)
    return max(8, _round_up(pl.cdiv(B, steps), 8))


def deep_nn_forward(x_nchw, params, *, tb_cap=2048):
    """x_nchw: [B, 1, 28, 28] float32. Returns logits [B, num_classes] float32."""
    B = x_nchw.shape[0]
    x = x_nchw.reshape(B, -1).astype(jnp.float32)   # nn.Flatten (no pad, no bf16 copy)
    (w1, b1), (w2, b2), (w3, b3), (w4, b4) = params
    in_dim = w1.shape[0]                            # 784
    num_classes = w4.shape[1]

    # ---- lane-dense padding of OUTPUT widths only (K stays 784) ----
    U1 = _round_up(w1.shape[1], 128)
    U2 = _round_up(w2.shape[1], 128)
    U3 = _round_up(w3.shape[1], 128)
    NC = _round_up(num_classes, 128)                # 10 -> 128

    def pad_w(w, rows, cols):
        return jnp.pad(w, ((0, rows - w.shape[0]),
                           (0, cols - w.shape[1]))).astype(jnp.bfloat16)

    def pad_b(b, cols):
        return jnp.pad(b, (0, cols - b.shape[0])).reshape(1, cols).astype(jnp.float32)

    w1p = pad_w(w1, in_dim, U1); b1p = pad_b(b1, U1)
    w2p = pad_w(w2, U1, U2);     b2p = pad_b(b2, U2)
    w3p = pad_w(w3, U2, U3);     b3p = pad_b(b3, U3)
    w4p = pad_w(w4, U3, NC);     b4p = pad_b(b4, NC)

    # ---- batch tiling: no padding of B; partial boundary block is discarded ----
    TB = _choose_tb(B, tb_cap)
    grid = (pl.cdiv(B, TB),)

    const = lambda i: (0, 0)   # weights/biases: same block every step -> DMA'd once
    out = pl.pallas_call(
        mlp_kernel,
        out_shape=jax.ShapeDtypeStruct((B, NC), jnp.bfloat16),   # bf16 writeback
        grid=grid,
        in_specs=[
            pl.BlockSpec((TB, in_dim), lambda i: (i, 0)),        # streamed f32 tile
            pl.BlockSpec(w1p.shape, const), pl.BlockSpec(b1p.shape, const),
            pl.BlockSpec(w2p.shape, const), pl.BlockSpec(b2p.shape, const),
            pl.BlockSpec(w3p.shape, const), pl.BlockSpec(b3p.shape, const),
            pl.BlockSpec(w4p.shape, const), pl.BlockSpec(b4p.shape, const),
        ],
        out_specs=pl.BlockSpec((TB, NC), lambda i: (i, 0)),      # lane-dense output
        compiler_params=pltpu.CompilerParams(
            dimension_semantics=("parallel",),                   # megacore on v7x
            vmem_limit_bytes=48 * 1024 * 1024),
    )(x, w1p, b1p, w2p, b2p, w3p, b3p, w4p, b4p)

    return out[:, :num_classes].astype(jnp.float32)


def init_params(key, in_dim, units1, units2, units3, num_classes):
    """Deterministic init mimicking nn.Linear's uniform(-1/sqrt(fan_in), +)."""
    dims = [(in_dim, units1), (units1, units2), (units2, units3),
            (units3, num_classes)]
    params = []
    for (fan_in, fan_out) in dims:
        key, kw, kb = jax.random.split(key, 3)
        bound = 1.0 / jnp.sqrt(fan_in)
        # stored as [in, out] (transposed vs. PyTorch's [out, in])
        w = jax.random.uniform(kw, (fan_in, fan_out), jnp.float32,
                               minval=-bound, maxval=bound)
        b = jax.random.uniform(kb, (fan_out,), jnp.float32,
                               minval=-bound, maxval=bound)
        params.append((w, b))
    return params


def reference_forward(x_nchw, params):
    x = x_nchw.reshape(x_nchw.shape[0], -1)
    (w1, b1), (w2, b2), (w3, b3), (w4, b4) = params
    h = jnp.maximum(x @ w1 + b1, 0.0)
    h = jnp.maximum(h @ w2 + b2, 0.0)
    h = jnp.maximum(h @ w3 + b3, 0.0)
    return h @ w4 + b4


if __name__ == "__main__":
    key = jax.random.PRNGKey(0)
    k_x, k_x2, k_p = jax.random.split(key, 3)

    num_classes = 10
    units1, units2, units3 = 128, 64, 32
    params = init_params(k_p, 28 * 28, units1, units2, units3, num_classes)

    # Small batch: single grid step, partial (2-of-8 rows) boundary block.
    B = 2
    x = jax.random.normal(k_x, (B, 1, 28, 28), jnp.float32)
    out = jax.block_until_ready(deep_nn_forward(x, params))
    ref = reference_forward(x, params)
    assert out.shape == (B, num_classes)
    assert jnp.allclose(out, ref, atol=5e-2, rtol=5e-2), \
        f"max err {jnp.max(jnp.abs(out - ref))}"

    # Multi-step pipelined grid + ragged boundary block (no batch padding):
    # B=100 with tb_cap=64 -> TB=56, grid=(2,), last block has 12 discarded rows.
    B2 = 100
    x2 = jax.random.normal(k_x2, (B2, 1, 28, 28), jnp.float32)
    out2 = jax.block_until_ready(deep_nn_forward(x2, params, tb_cap=64))
    ref2 = reference_forward(x2, params)
    assert out2.shape == (B2, num_classes)
    assert jnp.allclose(out2, ref2, atol=5e-2, rtol=5e-2), \
        f"max err {jnp.max(jnp.abs(out2 - ref2))}"

    print("KERNEL_OK")
</pallas_src>

<mosaic_0001>
module attributes {stable_mosaic.version = 11 : i64} {
  func.func @mlp_kernel(%arg0: i32, %arg1: memref<8x784xf32, #tpu.memory_space<vmem>>, %arg2: memref<784x128xbf16, #tpu.memory_space<vmem>>, %arg3: memref<1x128xf32, #tpu.memory_space<vmem>>, %arg4: memref<128x128xbf16, #tpu.memory_space<vmem>>, %arg5: memref<1x128xf32, #tpu.memory_space<vmem>>, %arg6: memref<128x128xbf16, #tpu.memory_space<vmem>>, %arg7: memref<1x128xf32, #tpu.memory_space<vmem>>, %arg8: memref<128x128xbf16, #tpu.memory_space<vmem>>, %arg9: memref<1x128xf32, #tpu.memory_space<vmem>>, %arg10: memref<8x128xbf16, #tpu.memory_space<vmem>>) attributes {dimension_semantics = [#tpu.dimension_semantics<parallel>], iteration_bounds = array<i64: 1>, scalar_prefetch = 0 : i64, scratch_operands = 0 : i64, tpu.core_type = #tpu.core_type<tc>, window_params = [{transform_indices = @transform_0, window_bounds = array<i64: 8, 784>}, {pipeline_mode = #tpu.pipeline_mode<synchronous>, transform_indices = @transform_1, window_bounds = array<i64: 784, 128>}, {pipeline_mode = #tpu.pipeline_mode<synchronous>, transform_indices = @transform_2, window_bounds = array<i64: 1, 128>}, {pipeline_mode = #tpu.pipeline_mode<synchronous>, transform_indices = @transform_3, window_bounds = array<i64: 128, 128>}, {pipeline_mode = #tpu.pipeline_mode<synchronous>, transform_indices = @transform_4, window_bounds = array<i64: 1, 128>}, {pipeline_mode = #tpu.pipeline_mode<synchronous>, transform_indices = @transform_5, window_bounds = array<i64: 128, 128>}, {pipeline_mode = #tpu.pipeline_mode<synchronous>, transform_indices = @transform_6, window_bounds = array<i64: 1, 128>}, {pipeline_mode = #tpu.pipeline_mode<synchronous>, transform_indices = @transform_7, window_bounds = array<i64: 128, 128>}, {pipeline_mode = #tpu.pipeline_mode<synchronous>, transform_indices = @transform_8, window_bounds = array<i64: 1, 128>}, {transform_indices = @transform_9, window_bounds = array<i64: 8, 128>}]} {
    %c0 = arith.constant 0 : index
    %c0_0 = arith.constant 0 : index
    %0 = vector.load %arg1[%c0, %c0_0] : memref<8x784xf32, #tpu.memory_space<vmem>>, vector<8x784xf32>
    %1 = arith.truncf %0 : vector<8x784xf32> to vector<8x784xbf16>
    %c0_1 = arith.constant 0 : index
    %c0_2 = arith.constant 0 : index
    %2 = vector.load %arg2[%c0_1, %c0_2] : memref<784x128xbf16, #tpu.memory_space<vmem>>, vector<784x128xbf16>
    %cst = arith.constant dense<0.000000e+00> : vector<8x128xf32>
    %3 = tpu.matmul %1, %2, %cst {dimension_numbers = #tpu.dot_dimension_numbers<[1], [0], [0], [1], [0, 0, 1, 1], [], []>} : vector<8x784xbf16>, vector<784x128xbf16>, vector<8x128xf32> -> vector<8x128xf32>
    %c0_3 = arith.constant 0 : index
    %c0_4 = arith.constant 0 : index
    %4 = vector.load %arg3[%c0_3, %c0_4] : memref<1x128xf32, #tpu.memory_space<vmem>>, vector<1x128xf32>
    %5 = vector.broadcast %4 : vector<1x128xf32> to vector<8x128xf32>
    %6 = arith.addf %3, %5 : vector<8x128xf32>
    %cst_5 = arith.constant 0.000000e+00 : f32
    %7 = vector.broadcast %cst_5 : f32 to vector<8x128xf32>
    %8 = arith.maximumf %6, %7 : vector<8x128xf32>
    %9 = arith.truncf %8 : vector<8x128xf32> to vector<8x128xbf16>
    %c0_6 = arith.constant 0 : index
    %c0_7 = arith.constant 0 : index
    %10 = vector.load %arg4[%c0_6, %c0_7] : memref<128x128xbf16, #tpu.memory_space<vmem>>, vector<128x128xbf16>
    %cst_8 = arith.constant dense<0.000000e+00> : vector<8x128xf32>
    %11 = tpu.matmul %9, %10, %cst_8 {dimension_numbers = #tpu.dot_dimension_numbers<[1], [0], [0], [1], [0, 0, 1, 1], [], []>} : vector<8x128xbf16>, vector<128x128xbf16>, vector<8x128xf32> -> vector<8x128xf32>
    %c0_9 = arith.constant 0 : index
    %c0_10 = arith.constant 0 : index
    %12 = vector.load %arg5[%c0_9, %c0_10] : memref<1x128xf32, #tpu.memory_space<vmem>>, vector<1x128xf32>
    %13 = vector.broadcast %12 : vector<1x128xf32> to vector<8x128xf32>
    %14 = arith.addf %11, %13 : vector<8x128xf32>
    %cst_11 = arith.constant 0.000000e+00 : f32
    %15 = vector.broadcast %cst_11 : f32 to vector<8x128xf32>
    %16 = arith.maximumf %14, %15 : vector<8x128xf32>
    %17 = arith.truncf %16 : vector<8x128xf32> to vector<8x128xbf16>
    %c0_12 = arith.constant 0 : index
    %c0_13 = arith.constant 0 : index
    %18 = vector.load %arg6[%c0_12, %c0_13] : memref<128x128xbf16, #tpu.memory_space<vmem>>, vector<128x128xbf16>
    %cst_14 = arith.constant dense<0.000000e+00> : vector<8x128xf32>
    %19 = tpu.matmul %17, %18, %cst_14 {dimension_numbers = #tpu.dot_dimension_numbers<[1], [0], [0], [1], [0, 0, 1, 1], [], []>} : vector<8x128xbf16>, vector<128x128xbf16>, vector<8x128xf32> -> vector<8x128xf32>
    %c0_15 = arith.constant 0 : index
    %c0_16 = arith.constant 0 : index
    %20 = vector.load %arg7[%c0_15, %c0_16] : memref<1x128xf32, #tpu.memory_space<vmem>>, vector<1x128xf32>
    %21 = vector.broadcast %20 : vector<1x128xf32> to vector<8x128xf32>
    %22 = arith.addf %19, %21 : vector<8x128xf32>
    %cst_17 = arith.constant 0.000000e+00 : f32
    %23 = vector.broadcast %cst_17 : f32 to vector<8x128xf32>
    %24 = arith.maximumf %22, %23 : vector<8x128xf32>
    %25 = arith.truncf %24 : vector<8x128xf32> to vector<8x128xbf16>
    %c0_18 = arith.constant 0 : index
    %c0_19 = arith.constant 0 : index
    %26 = vector.load %arg8[%c0_18, %c0_19] : memref<128x128xbf16, #tpu.memory_space<vmem>>, vector<128x128xbf16>
    %cst_20 = arith.constant dense<0.000000e+00> : vector<8x128xf32>
    %27 = tpu.matmul %25, %26, %cst_20 {dimension_numbers = #tpu.dot_dimension_numbers<[1], [0], [0], [1], [0, 0, 1, 1], [], []>} : vector<8x128xbf16>, vector<128x128xbf16>, vector<8x128xf32> -> vector<8x128xf32>
    %c0_21 = arith.constant 0 : index
    %c0_22 = arith.constant 0 : index
    %28 = vector.load %arg9[%c0_21, %c0_22] : memref<1x128xf32, #tpu.memory_space<vmem>>, vector<1x128xf32>
    %29 = vector.broadcast %28 : vector<1x128xf32> to vector<8x128xf32>
    %30 = arith.addf %27, %29 : vector<8x128xf32>
    %31 = arith.truncf %30 : vector<8x128xf32> to vector<8x128xbf16>
    %c0_23 = arith.constant 0 : index
    %c0_24 = arith.constant 0 : index
    %32 = vector.load %arg10[%c0_23, %c0_24] : memref<8x128xbf16, #tpu.memory_space<vmem>>, vector<8x128xbf16>
    tpu.vector_store %arg10[%c0_23, %c0_24], %31 {strides = array<i32>} : memref<8x128xbf16, #tpu.memory_space<vmem>>, vector<8x128xbf16>,
    return
  }
  func.func @transform_0(%arg0: i32) -> (i32, i32) {
    %c0_i32 = arith.constant 0 : i32
    %c0_i32_0 = arith.constant 0 : i32
    return %arg0, %c0_i32 : i32, i32
  }
  func.func @transform_1(%arg0: i32) -> (i32, i32) {
    %c0_i32 = arith.constant 0 : i32
    %c0_i32_0 = arith.constant 0 : i32
    %c0_i32_1 = arith.constant 0 : i32
    return %c0_i32, %c0_i32_0 : i32, i32
  }
  func.func @transform_2(%arg0: i32) -> (i32, i32) {
    %c0_i32 = arith.constant 0 : i32
    %c0_i32_0 = arith.constant 0 : i32
    %c0_i32_1 = arith.constant 0 : i32
    return %c0_i32, %c0_i32_0 : i32, i32
  }
  func.func @transform_3(%arg0: i32) -> (i32, i32) {
    %c0_i32 = arith.constant 0 : i32
    %c0_i32_0 = arith.constant 0 : i32
    %c0_i32_1 = arith.constant 0 : i32
    return %c0_i32, %c0_i32_0 : i32, i32
  }
  func.func @transform_4(%arg0: i32) -> (i32, i32) {
    %c0_i32 = arith.constant 0 : i32
    %c0_i32_0 = arith.constant 0 : i32
    %c0_i32_1 = arith.constant 0 : i32
    return %c0_i32, %c0_i32_0 : i32, i32
  }
  func.func @transform_5(%arg0: i32) -> (i32, i32) {
    %c0_i32 = arith.constant 0 : i32
    %c0_i32_0 = arith.constant 0 : i32
    %c0_i32_1 = arith.constant 0 : i32
    return %c0_i32, %c0_i32_0 : i32, i32
  }
  func.func @transform_6(%arg0: i32) -> (i32, i32) {
    %c0_i32 = arith.constant 0 : i32
    %c0_i32_0 = arith.constant 0 : i32
    %c0_i32_1 = arith.constant 0 : i32
    return %c0_i32, %c0_i32_0 : i32, i32
  }
  func.func @transform_7(%arg0: i32) -> (i32, i32) {
    %c0_i32 = arith.constant 0 : i32
    %c0_i32_0 = arith.constant 0 : i32
    %c0_i32_1 = arith.constant 0 : i32
    return %c0_i32, %c0_i32_0 : i32, i32
  }
  func.func @transform_8(%arg0: i32) -> (i32, i32) {
    %c0_i32 = arith.constant 0 : i32
    %c0_i32_0 = arith.constant 0 : i32
    %c0_i32_1 = arith.constant 0 : i32
    return %c0_i32, %c0_i32_0 : i32, i32
  }
  func.func @transform_9(%arg0: i32) -> (i32, i32) {
    %c0_i32 = arith.constant 0 : i32
    %c0_i32_0 = arith.constant 0 : i32
    return %arg0, %c0_i32 : i32, i32
  }
}

</mosaic_0001>

<bundles_post_ra>
// kernel: tpu_custom_call.1
= control target key start
LH: loop header
LB: loop body
LE: loop exit
PB: predicated region body
PF: predicated region fallthrough
CT: control target
= control target key end

     0   :  { %14 = vsyncpa [#allocation3], 0  ;;  %s1850_s0 = inlined_call_operand.hbm [shape: f32[2,784], index: 0, kind: input, shape index: {}]   ;;  %s1851_s1 = inlined_call_operand.hbm [shape: bf16[784,128], index: 1, kind: input, shape index: {}]   ;;  %s1852_s2 = inlined_call_operand.vmem [shape: f32[1,128], index: 2, kind: input, shape index: {}]   ;;  %s1853_s3 = inlined_call_operand.hbm [shape: bf16[128,128], index: 3, kind: input, shape index: {}]   ;;  %s1854_s4 = inlined_call_operand.vmem [shape: f32[1,128], index: 4, kind: input, shape index: {}]   ;;  %s1855_s5 = inlined_call_operand.hbm [shape: bf16[128,128], index: 5, kind: input, shape index: {}]   ;;  %s1856_s6 = inlined_call_operand.vmem [shape: f32[1,128], index: 6, kind: input, shape index: {}]   ;;  %s1857_s7 = inlined_call_operand.hbm [shape: bf16[128,128], index: 7, kind: input, shape index: {}]   ;;  %s1858_s8 = inlined_call_operand.vmem [shape: f32[1,128], index: 8, kind: input, shape index: {}]   ;;  %s1859_s9 = inlined_call_operand.hbm [shape: bf16[2,128], index: 9, kind: output, shape index: {}]  }
   0x1   :  { %15 = vsyncpa [#allocation6], 0 }
   0x2   :  { %16 = vsyncpa [#allocation9], 0 }
   0x3   :  { %17 = vsyncpa [#allocation4], 0 }
   0x4   :  { %22 = vsyncadd [#allocation3], 672  ;;  %s1640_s30 = smov [#allocation5]   ;;  %s1500_s13 = scalar_lea.hbm %s1851_s1, 6272 }
   0x5   :  { %s35_s10 = sshll.u32 %s1640_s30, 4  ;;  %p1501_p0 = scmp.ne.s32.totalorder %s1851_s1, %s1500_s13  ;;  %s36_s10 = int_to_ptr.vmem [resolvable:$true] %s35_s10 }
   0x6   :  { %p1504_p1 = scmp.lt.u32.totalorder %s1500_s13, %s1851_s1 }
   0x8   :  { %p1506_p2 = pnand %p1504_p1, %p1501_p0 }
   0xa   :  { %1509 = shalt.err (!%p1506_p2)
}
   0xb   :  { %s1510_s18 = scalar_lea.vmem %s36_s10, 6272  ;;  %p1515_p4 = scmp.lt.s32.totalorder %s36_s10, %s36_s10 }
   0xc   :  { %p1511_p3 = scmp.ne.s32.totalorder %s36_s10, %s1510_s18  ;;  %p1516_p5 = scmp.lt.s32.totalorder %s1510_s18, %s1510_s18 }
   0xe   :  { %p1517_p6 = por %p1516_p5, %p1515_p4 }
  0x10   :  { %p1518_p7 = pnand %p1517_p6, %p1511_p3 }
  0x12   :  { %1521 = shalt.err (!%p1518_p7)
}
  0x13   :  { %s1641_s19 = smov 64   ;;  %s1642_s20 = smov 4  }
  0x14   :  { %41 = dma.hbm_to_vmem [thread:$0]  %s1851_s1, 6272, %s36_s10, [#allocation6], %s1641_s19, %s1641_s19, %s1642_s20  }
  0x15   :  { %s1643_s23 = smov [#allocation8]   ;;  %s1644_s25 = smov [#allocation2]  }
  0x16   :  { %s63_s24 = sshll.u32 %s1643_s23, 4  ;;  %s23_s26 = sshll.u32 %s1644_s25, 4  ;;  %s64_s24 = int_to_ptr.vmem [resolvable:$true] %s63_s24  ;;  %s24_s26 = int_to_ptr.vmem [resolvable:$true] %s23_s26 }
  0x17   :  { %s1522_s29 = scalar_lea.hbm %s1855_s5, 1024 }
  0x18   :  { %p1523_p8 = scmp.ne.s32.totalorder %s1855_s5, %s1522_s29  ;;  %p1526_p9 = scmp.lt.u32.totalorder %s1522_s29, %s1855_s5 }
  0x1a   :  { %p1528_p10 = pnand %p1526_p9, %p1523_p8 }
  0x1c   :  { %1531 = shalt.err (!%p1528_p10)
}
  0x1d   :  { %s1532_s1 = scalar_lea.vmem %s64_s24, 1024  ;;  %p1537_p12 = scmp.lt.s32.totalorder %s64_s24, %s64_s24 }
  0x1e   :  { %p1533_p11 = scmp.ne.s32.totalorder %s64_s24, %s1532_s1  ;;  %p1538_p13 = scmp.lt.s32.totalorder %s1532_s1, %s1532_s1 }
  0x20   :  { %p1539_p0 = por %p1538_p13, %p1537_p12 }
  0x22   :  { %p1540_p1 = pnand %p1539_p0, %p1533_p11 }
  0x24   :  { %1543 = shalt.err (!%p1540_p1)
}
  0x25   :  { %69 = dma.hbm_to_vmem [thread:$0]  %s1855_s5, 1024, %s64_s24, [#allocation9], %s1641_s19, %s1641_s19, %s1642_s20  }
  0x26   :  { %s1544_s17 = scalar_lea.hbm %s1850_s0, 224 }
  0x27   :  { %p1545_p2 = scmp.ne.s32.totalorder %s1850_s0, %s1544_s17  ;;  %p1548_p3 = scmp.lt.u32.totalorder %s1544_s17, %s1850_s0 }
  0x29   :  { %p1550_p4 = pnand %p1548_p3, %p1545_p2 }
  0x2b   :  { %1553 = shalt.err (!%p1550_p4)
}
  0x2c   :  { %s1554_s25 = scalar_lea.vmem %s24_s26, 224  ;;  %s1558_s27 = scalar_lea.vmem %s24_s26, 896 }
  0x2d   :  { %p1555_p5 = scmp.ne.s32.totalorder %s24_s26, %s1554_s25  ;;  %p1559_p6 = scmp.lt.s32.totalorder %s24_s26, %s24_s26 }
  0x2e   :  { %p1560_p7 = scmp.lt.s32.totalorder %s1558_s27, %s1554_s25 }
  0x30   :  { %p1561_p8 = por %p1560_p7, %p1559_p6 }
  0x32   :  { %p1562_p9 = pnand %p1561_p8, %p1555_p5 }
  0x34   :  { %1565 = shalt.err (!%p1562_p9)
}
  0x35   :  { %s1645_s5 = smov 224   ;;  %s1646_s24 = smov 14  }
  0x36   :  { %29 = dma.hbm_to_vmem [thread:$0]  %s1850_s0, 224, %s24_s26, [#allocation3], %s1645_s5, %s1645_s5, %s1646_s24  }
  0x37   :  { %s1647_s30 = smov [#allocation7]   ;;  %s1648_s12 = smov [#allocation10]  }
  0x38   :  { %s49_s11 = sshll.u32 %s1647_s30, 4  ;;  %s77_s13 = sshll.u32 %s1648_s12, 4  ;;  %s50_s11 = int_to_ptr.vmem [resolvable:$true] %s49_s11  ;;  %s78_s13 = int_to_ptr.vmem [resolvable:$true] %s77_s13 }
  0x39   :  { %s1566_s14 = scalar_lea.hbm %s1853_s3, 1024 }
  0x3a   :  { %p1567_p10 = scmp.ne.s32.totalorder %s1853_s3, %s1566_s14  ;;  %p1570_p11 = scmp.lt.u32.totalorder %s1566_s14, %s1853_s3 }
  0x3c   :  { %p1572_p12 = pnand %p1570_p11, %p1567_p10 }
  0x3e   :  { %1575 = shalt.err (!%p1572_p12)
}
  0x3f   :  { %s1576_s0 = scalar_lea.vmem %s50_s11, 1024  ;;  %p1581_p0 = scmp.lt.s32.totalorder %s50_s11, %s50_s11 }
  0x40   :  { %p1577_p13 = scmp.ne.s32.totalorder %s50_s11, %s1576_s0  ;;  %p1582_p1 = scmp.lt.s32.totalorder %s1576_s0, %s1576_s0 }
  0x42   :  { %p1583_p2 = por %p1582_p1, %p1581_p0 }
  0x44   :  { %p1584_p3 = pnand %p1583_p2, %p1577_p13 }
  0x46   :  { %1587 = shalt.err (!%p1584_p3)
}
  0x47   :  { %55 = dma.hbm_to_vmem [thread:$0]  %s1853_s3, 1024, %s50_s11, [#allocation6], %s1641_s19, %s1641_s19, %s1642_s20  }
  0x48   :  { %s1588_s25 = scalar_lea.hbm %s1857_s7, 1024 }
  0x49   :  { %p1589_p4 = scmp.ne.s32.totalorder %s1857_s7, %s1588_s25  ;;  %p1592_p5 = scmp.lt.u32.totalorder %s1588_s25, %s1857_s7 }
  0x4b   :  { %p1594_p6 = pnand %p1592_p5, %p1589_p4 }
  0x4d   :  { %1597 = shalt.err (!%p1594_p6)
}
  0x4e   :  { %s1598_s29 = scalar_lea.vmem %s78_s13, 1024  ;;  %p1603_p8 = scmp.lt.s32.totalorder %s78_s13, %s78_s13 }
  0x4f   :  { %p1599_p7 = scmp.ne.s32.totalorder %s78_s13, %s1598_s29  ;;  %p1604_p9 = scmp.lt.s32.totalorder %s1598_s29, %s1598_s29 }
  0x51   :  { %p1605_p10 = por %p1604_p9, %p1603_p8 }
  0x53   :  { %p1606_p11 = pnand %p1605_p10, %p1599_p7 }
  0x55   :  { %1609 = shalt.err (!%p1606_p11)
}
  0x56   :  { %83 = dma.hbm_to_vmem [thread:$0]  %s1857_s7, 1024, %s78_s13, [#allocation9], %s1641_s19, %s1641_s19, %s1642_s20  }
  0x57   :  { %1632 = dma.done.wait [#allocation3], 896  }
  0x58   :  { %1633 = vsyncadd [#allocation3], 4294966400 }
  0x59   :  { %1634 = dma.done.wait [#allocation6], 7296  }
  0x5a   :  { %1635 = vsyncadd [#allocation6], 4294960000 }
  0x5b   :  { %1636 = dma.done.wait [#allocation9], 2048  }
  0x5c   :  { %1637 = vsyncadd [#allocation9], 4294965248  ;;  %v1415_v0 = vld [vmem:[#allocation5 + $0x40] sm:$0xff]   ;;  %v1419_v4 = vld [vmem:[#allocation5 + $0x48] sm:$0xff]   ;;  %v1649_v23 = vmov 1983009808   ;;  %v125_v25 = vlaneseq }
  0x5d   :  { %v1416_v1 = vld [vmem:[#allocation5] sm:$0xff]   ;;  %1238 = vmatprep.subr.bf16.mxu0 %v1415_v0  ;;  %v1420_v5 = vld [vmem:[#allocation5 + $0x8] sm:$0xff]   ;;  %v1423_v8 = vld [vmem:[#allocation5 + $0x50] sm:$0xff]   ;;  %v123_v24 = vunpack.c.l.s4 %v1649_v23  ;;  %v1650_v47 = vmov 0.0   ;;  %vm1651_vm0 = vmmov 0   ;;  %vm602_vm1 = vcmask 130048  }
  0x5e   :  { %v1417_v2 = vld [vmem:[#allocation5 + $0xc0] sm:$0xff]   ;;  %1239 = vmatpush3.bf16.msra.mxu0 %v1416_v1  ;;  %v1421_v6 = vld [vmem:[#allocation5 + $0xc8] sm:$0xff]   ;;  %v1424_v9 = vld [vmem:[#allocation5 + $0x10] sm:$0xff]   ;;  %v1778_v31 = vshrl.u32 %v125_v25, 7 }
  0x5f   :  { %v1418_v3 = vld [vmem:[#allocation5 + $0x80] sm:$0xff]   ;;  %1260 = vmatprep.subr.bf16.mxu1 %v1417_v2  ;;  %1240 = vmatprep.subr.bf16.mxu0 %v1419_v4  ;;  %v1422_v7 = vld [vmem:[#allocation5 + $0x88] sm:$0xff]   ;;  %v1425_v10 = vld [vmem:[#allocation5 + $0xd0] sm:$0xff]   ;;  %v124_v30 = vunpack.c.0.s8 %v123_v24 }
  0x60   :  { %1261 = vmatpush3.bf16.msra.mxu1 %v1418_v3  ;;  %v1426_v11 = vld [vmem:[#allocation5 + $0x90] sm:$0xff]   ;;  %v1427_v12 = vld [vmem:[#allocation5 + $0x58] sm:$0xff]   ;;  %v1431_v16 = vld [vmem:[#allocation5 + $0x60] sm:$0xff]  }
  0x61   :  { %1262 = vmatprep.subr.bf16.mxu1 %v1421_v6  ;;  %v1428_v13 = vld [vmem:[#allocation5 + $0x18] sm:$0xff]   ;;  %v1432_v17 = vld [vmem:[#allocation5 + $0x20] sm:$0xff]   ;;  %v1435_v20 = vld [vmem:[#allocation5 + $0x68] sm:$0xff]   ;;  %v1781_v36 = vsub.s32 %v124_v30, %v1778_v31 }
  0x62   :  { %1241 = vmatpush3.bf16.msra.mxu0 %v1420_v5  ;;  %v1429_v14 = vld [vmem:[#allocation5 + $0xd8] sm:$0xff]   ;;  %v1433_v18 = vld [vmem:[#allocation5 + $0xe0] sm:$0xff]   ;;  %v1436_v21 = vld [vmem:[#allocation5 + $0x28] sm:$0xff]  }
  0x63   :  { %1242 = vmatprep.subr.bf16.mxu0 %v1423_v8  ;;  %v1430_v15 = vld [vmem:[#allocation5 + $0x98] sm:$0xff]   ;;  %v1434_v19 = vld [vmem:[#allocation5 + $0xa0] sm:$0xff]   ;;  %v1437_v22 = vld [vmem:[#allocation5 + $0xe8] sm:$0xff]  }
  0x64   :  { %1263 = vmatpush3.bf16.msra.mxu1 %v1422_v7  ;;  %v1438_v26 = vld [vmem:[#allocation5 + $0xa8] sm:$0xff]   ;;  %v1439_v27 = vld [vmem:[#allocation5 + $0x70] sm:$0xff]   ;;  %v1443_v33 = vld [vmem:[#allocation5 + $0x78] sm:$0xff]  }
  0x65   :  { %1264 = vmatprep.subr.bf16.mxu1 %v1425_v10  ;;  %v1440_v28 = vld [vmem:[#allocation5 + $0x30] sm:$0xff]   ;;  %v1444_v34 = vld [vmem:[#allocation5 + $0x38] sm:$0xff]   ;;  %v1451_v42 = vld [vmem:[#allocation5 + $0x140] sm:$0xff]  }
  0x66   :  { %1243 = vmatpush3.bf16.msra.mxu0 %v1424_v9  ;;  %v1441_v29 = vld [vmem:[#allocation5 + $0xf0] sm:$0xff]   ;;  %v1445_v35 = vld [vmem:[#allocation5 + $0xf8] sm:$0xff]   ;;  %v1454_v52 = vld [vmem:[#allocation5 + $0x100] sm:$0xff]  }
  0x67   :  { %1244 = vmatprep.subr.bf16.mxu0 %v1427_v12  ;;  %v1442_v32 = vld [vmem:[#allocation5 + $0xb0] sm:$0xff]   ;;  %v1450_v39 = vld [vmem:[#allocation5 + $0xb8] sm:$0xff]   ;;  %v1455_v55 = vld [vmem:[#allocation5 + $0x148] sm:$0xff]  }
  0x68   :  { %1265 = vmatpush3.bf16.msra.mxu1 %v1426_v11  ;;  %v1446_v37 = vld [vmem:[#allocation2] ss:$14 sps:$4 sm:$0xff]   ;;  %v1448_v38 = vld [vmem:[#allocation2 + $0x1c] ss:$14 sps:$4 sm:$0xff]   ;;  %v1452_v43 = vld [vmem:[#allocation2 + $0x4] ss:$14 sps:$4 sm:$0xff]  }
  0x69   :  { %1266 = vmatprep.subr.bf16.mxu1 %v1429_v14  ;;  %v128_v40 = vrot.slane %v1446_v37, %v1781_v36  ;;  %v142_v41 = vrot.slane %v1448_v38, %v1781_v36  ;;  %v1453_v44 = vld [vmem:[#allocation2 + $0x20] ss:$14 sps:$4 sm:$0xff]   ;;  %v135_v48 = vrot.slane %v1452_v43, %v1781_v36  ;;  %v1461_v63 = vld [vmem:[#allocation5 + $0x160] sm:$0xff]   ;;  %v1473_v5 = vld [vmem:[#allocation2 + $0x24] ss:$14 sps:$4 sm:$0xff]  }
  0x6a   :  { %1245 = vmatpush3.bf16.msra.mxu0 %v1428_v13  ;;  %v149_v49 = vrot.slane %v1453_v44, %v1781_v36  ;;  %v1456_v58 = vld [vmem:[#allocation5 + $0x108] sm:$0xff]   ;;  %v1457_v59 = vld [vmem:[#allocation5 + $0x150] sm:$0xff]   ;;  %v1459_v61 = vld [vmem:[#allocation5 + $0x158] sm:$0xff]   ;;  %v178_v10 = vrot.slane %v1473_v5, %v1781_v36 }
  0x6b   :  { %1246 = vmatprep.subr.bf16.mxu0 %v1431_v16  ;;  %v151_v45 = vcombine.high %v128_v40, %v142_v41  ;;  %v150_v46 = vcombine.low %v128_v40, %v142_v41  ;;  %v1458_v60 = vld [vmem:[#allocation5 + $0x110] sm:$0xff]   ;;  %v1460_v62 = vld [vmem:[#allocation5 + $0x118] sm:$0xff]   ;;  %v1469_v0 = vld [vmem:[#allocation5 + $0x180] sm:$0xff]  }
  0x6c   :  { %1267 = vmatpush3.bf16.msra.mxu1 %v1430_v15  ;;  %v153_v53 = vcombine.high %v135_v48, %v149_v49  ;;  %v152_v54 = vcombine.low %v135_v48, %v149_v49  ;;  %v1462_v1 = vld [vmem:[#allocation5 + $0x120] sm:$0xff]   ;;  %v1463_v4 = vld [vmem:[#allocation5 + $0x168] sm:$0xff]   ;;  %v1475_v6 = vld [vmem:[#allocation2 + $0x28] ss:$14 sps:$4 sm:$0x33]  }
  0x6d   :  { %1268 = vmatprep.subr.bf16.mxu1 %v1433_v18  ;;  %v197_v50 = vpack.c.bf16 %v151_v45, %v151_v45  ;;  %v196_v51 = vpack.c.bf16 %v150_v46, %v150_v46  ;;  %v1470_v2 = vld [vmem:[#allocation2 + $0x8] ss:$14 sps:$4 sm:$0xff]   ;;  %v1472_v3 = vld [vmem:[#allocation2 + $0xc] ss:$14 sps:$4 sm:$0x33]   ;;  %v1464_v9 = vld [vmem:[#allocation5 + $0x128] sm:$0xff]   ;;  %v185_v11 = vrot.slane %v1475_v6, %v1781_v36 }
  0x6e   :  { %1247 = vmatpush3.bf16.msra.mxu0 %v1432_v17  ;;  %v199_v56 = vpack.c.bf16 %v153_v53, %v153_v53  ;;  %v198_v57 = vpack.c.bf16 %v152_v54, %v152_v54  ;;  %v164_v7 = vrot.slane %v1470_v2, %v1781_v36  ;;  %v171_v8 = vrot.slane %v1472_v3, %v1781_v36  ;;  %v1465_v12 = vld [vmem:[#allocation5 + $0x170] sm:$0xff]   ;;  %v1467_v18 = vld [vmem:[#allocation5 + $0x178] sm:$0xff]   ;;  %v1479_v25 = vld [vmem:[#allocation7 + $0x18] sm:$0xff]  }
  0x6f   :  { %1248 = vmatprep.subr.bf16.mxu0 %v1435_v20  ;;  %638 = vmatprep.mubr.bf16.mxu0 %v197_v50  ;;  %v1466_v15 = vld [vmem:[#allocation5 + $0x130] sm:$0xff]   ;;  %v1478_v24 = vld [vmem:[#allocation7 + $0x10] sm:$0xff]   ;;  %v1484_v30 = vld [vmem:[#allocation8] sm:$0xff]  }
  0x70   :  { %1269 = vmatpush3.bf16.msra.mxu1 %v1434_v19  ;;  %678 = vmatprep.mubr.bf16.mxu1 %v199_v56  ;;  %v187_v13 = vcombine.high %v164_v7, %v178_v10  ;;  %v188_v14 = vcombine.low %v171_v8, %v185_v11  ;;  %v1468_v19 = vld [vmem:[#allocation5 + $0x138] sm:$0xff]   ;;  %v186_v20 = vcombine.low %v164_v7, %v178_v10  ;;  %v1477_v23 = vld [vmem:[#allocation7 + $0x8] sm:$0xff]   ;;  %v1158_v38 = vld [vmem:[%s1852_s2] ss:$0 sm:$0xff] }
  0x71   :  { %1270 = vmatprep.subr.bf16.mxu1 %v1437_v22  ;;  %v1476_v22 = vld [vmem:[#allocation7] sm:$0xff]   ;;  %v1489_v36 = vld [vmem:[#allocation8 + $0x28] sm:$0xff]   ;;  %v1495_v5 = vld [vmem:[#allocation10 + $0x18] sm:$0xff]  }
  0x72   :  { %1249 = vmatpush3.bf16.msra.mxu0 %v1436_v21  ;;  %v201_v16 = vpack.c.bf16 %v187_v13, %v187_v13  ;;  %v202_v17 = vpack.c.bf16 %v188_v14, %v188_v14  ;;  %v200_v21 = vpack.c.bf16 %v186_v20, %v186_v20  ;;  %v1492_v2 = vld [vmem:[#allocation10] sm:$0xff]   ;;  %v1493_v3 = vld [vmem:[#allocation10 + $0x8] sm:$0xff]  }
  0x73   :  { %1250 = vmatprep.subr.bf16.mxu0 %v1439_v27  ;;  %v1481_v27 = vld [vmem:[#allocation7 + $0x28] sm:$0xff]   ;;  %v1496_v6 = vld [vmem:[#allocation10 + $0x20] sm:$0xff]  }
  0x74   :  { %1271 = vmatpush3.bf16.msra.mxu1 %v1438_v26  ;;  %v1480_v26 = vld [vmem:[#allocation7 + $0x20] sm:$0xff]   ;;  %v1497_v7 = vld [vmem:[#allocation10 + $0x28] sm:$0xff]  }
  0x75   :  { %1272 = vmatprep.subr.bf16.mxu1 %v1441_v29  ;;  %v1483_v29 = vld [vmem:[#allocation7 + $0x38] sm:$0xff]   ;;  %v1209_v8 = vld [vmem:[%s1854_s4] ss:$0 sm:$0xff] }
  0x76   :  { %1251 = vmatpush3.bf16.msra.mxu0 %v1440_v28  ;;  %v1482_v28 = vld [vmem:[#allocation7 + $0x30] sm:$0xff]  }
  0x77   :  { %1252 = vmatprep.subr.bf16.mxu0 %v1443_v33  ;;  %v1486_v33 = vld [vmem:[#allocation8 + $0x10] sm:$0xff]  }
  0x78   :  { %1273 = vmatpush3.bf16.msra.mxu1 %v1442_v32  ;;  %v1485_v32 = vld [vmem:[#allocation8 + $0x8] sm:$0xff]  }
  0x79   :  { %1274 = vmatprep.subr.bf16.mxu1 %v1445_v35  ;;  %v1488_v35 = vld [vmem:[#allocation8 + $0x20] sm:$0xff]  }
  0x7a   :  { %1253 = vmatpush3.bf16.msra.mxu0 %v1444_v34  ;;  %v1487_v34 = vld [vmem:[#allocation8 + $0x18] sm:$0xff]  }
  0x7b   :  { %1282 = vmatprep.subr.bf16.mxu0 %v1451_v42 }
  0x7c   :  { %1275 = vmatpush3.bf16.msra.mxu1 %v1450_v39 }
  0x7d   :  { %1333 = vmatprep.subr.bf16.mxu1 %v1650_v47  ;;  %639 = vmatmul.mubr.bf16.vlgmr.msra.gmra.mrb[0].mxu0 %v196_v51 }
  0x7e   :  { %1283 = vmatpush3.bf16.msra.mxu0 %v1454_v52  ;;  %718 = vmatprep.mubr.bf16.mxu0 %v201_v16  ;;  %v1498_v16 = vld [vmem:[#allocation10 + $0x30] sm:$0xff]  }
  0x7f   :  { %1284 = vmatprep.subr.bf16.mxu0 %v1455_v55  ;;  %679 = vmatmul.mubr.bf16.vlgmr.msra.gmra.mrb[0].mxu1 %v198_v57 }
  0x80   :  { %1335 = vmatprep.mubr.msk.bf16.mxu1 %vm1651_vm0, %v1650_v47  ;;  %1334 = vmatpush3.bf16.msra.mxu1 %v1469_v0  ;;  %v1490_v0 = vld [vmem:[#allocation8 + $0x30] sm:$0xff]  }
  0x81   :  { %1339 = vmatprep.subr.bf16.mxu1 %v1650_v47 }
  0x82   :  { %1285 = vmatpush3.bf16.msra.mxu0 %v1456_v58 }
  0x83   :  { %1286 = vmatprep.subr.bf16.mxu0 %v1457_v59 }
  0x86   :  { %1287 = vmatpush3.bf16.msra.mxu0 %v1458_v60 }
  0x87   :  { %1288 = vmatprep.subr.bf16.mxu0 %v1459_v61  ;;  %1336 = vmatmul.mubr.msk.bf16.vlgmr.msra.gmra.mrb[4].mxu1 %vm602_vm1, %v202_v17  ;;  %v1499_v17 = vld [vmem:[#allocation10 + $0x38] sm:$0xff]  }
  0x88   :  { %1355 = vmatprep.mubr.msk.bf16.mxu1 %vm1651_vm0, %v1650_v47  ;;  %1340 = vmatpush3.bf16.msra.mxu1 %v1476_v22 }
  0x89   :  { %1341 = vmatprep.subr.bf16.mxu1 %v1650_v47 }
  0x8a   :  { %1289 = vmatpush3.bf16.msra.mxu0 %v1460_v62 }
  0x8b   :  { %1290 = vmatprep.subr.bf16.mxu0 %v1461_v63 }
  0x8c   :  { %1342 = vmatpush3.bf16.msra.mxu1 %v1477_v23 }
  0x8d   :  { %1343 = vmatprep.subr.bf16.mxu1 %v1650_v47 }
  0x8e   :  { %1291 = vmatpush3.bf16.msra.mxu0 %v1462_v1  ;;  %v1491_v1 = vld [vmem:[#allocation8 + $0x38] sm:$0xff]  }
  0x8f   :  { %1292 = vmatprep.subr.bf16.mxu0 %v1463_v4  ;;  %v1494_v4 = vld [vmem:[#allocation10 + $0x10] sm:$0xff]  }
  0x90   :  { %1344 = vmatpush3.bf16.msra.mxu1 %v1478_v24 }
  0x91   :  { %1345 = vmatprep.subr.bf16.mxu1 %v1650_v47 }
  0x92   :  { %1293 = vmatpush3.bf16.msra.mxu0 %v1464_v9 }
  0x93   :  { %1294 = vmatprep.subr.bf16.mxu0 %v1465_v12 }
  0x94   :  { %1346 = vmatpush3.bf16.msra.mxu1 %v1479_v25 }
  0x95   :  { %1347 = vmatprep.subr.bf16.mxu1 %v1650_v47 }
  0x96   :  { %1295 = vmatpush3.bf16.msra.mxu0 %v1466_v15 }
  0x97   :  { %1296 = vmatprep.subr.bf16.mxu0 %v1467_v18  ;;  %v1218_v18 = vld [vmem:[%s1856_s6] ss:$0 sm:$0xff] }
  0x98   :  { %1348 = vmatpush3.bf16.msra.mxu1 %v1480_v26  ;;  %v1652_v26 = vmov 1966171168  }
  0x99   :  { %1349 = vmatprep.subr.bf16.mxu1 %v1650_v47 }
  0x9a   :  { %1297 = vmatpush3.bf16.msra.mxu0 %v1468_v19 }
  0x9b   :  { %1359 = vmatprep.subr.bf16.mxu0 %v1650_v47 }
  0x9c   :  { %1350 = vmatpush3.bf16.msra.mxu1 %v1481_v27  ;;  %v1108_v27 = vunpack.c.l.s4 %v1652_v26 }
  0x9d   :  { %719 = vmatmul.mubr.bf16.vlgmr.msra.gmra.mrb[4].mxu0 %v200_v21  ;;  %1351 = vmatprep.subr.bf16.mxu1 %v1650_v47 }
  0x9e   :  { %1375 = vmatprep.mubr.msk.bf16.mxu0 %vm1651_vm0, %v1650_v47  ;;  %1360 = vmatpush3.bf16.msra.mxu0 %v1484_v30 }
  0x9f   :  { %1361 = vmatprep.subr.bf16.mxu0 %v1650_v47 }
  0xa0   :  { %1352 = vmatpush3.bf16.msra.mxu1 %v1482_v28  ;;  %v1109_v28 = vunpack.c.0.s8 %v1108_v27 }
  0xa1   :  { %1353 = vmatprep.subr.bf16.mxu1 %v1650_v47 }
  0xa2   :  { %1362 = vmatpush3.bf16.msra.mxu0 %v1485_v32  ;;  %v1112_v32 = vsub.s32 %v1109_v28, %v1778_v31 }
  0xa3   :  { %1363 = vmatprep.subr.bf16.mxu0 %v1650_v47 }
  0xa4   :  { %1354 = vmatpush3.bf16.msra.mxu1 %v1483_v29 }
  0xa5   :  { %1379 = vmatprep.subr.bf16.mxu1 %v1650_v47 }
  0xa6   :  { %1364 = vmatpush3.bf16.msra.mxu0 %v1486_v33 }
  0xa7   :  { %1365 = vmatprep.subr.bf16.mxu0 %v1650_v47 }
  0xaa   :  { %1366 = vmatpush3.bf16.msra.mxu0 %v1487_v34 }
  0xab   :  { %1367 = vmatprep.subr.bf16.mxu0 %v1650_v47 }
  0xae   :  { %1368 = vmatpush3.bf16.msra.mxu0 %v1488_v35 }
  0xaf   :  { %1369 = vmatprep.subr.bf16.mxu0 %v1650_v47 }
  0xb2   :  { %1370 = vmatpush3.bf16.msra.mxu0 %v1489_v36 }
  0xb3   :  { %1371 = vmatprep.subr.bf16.mxu0 %v1650_v47 }
  0xb6   :  { %1372 = vmatpush3.bf16.msra.mxu0 %v1490_v0 }
  0xb7   :  { %1373 = vmatprep.subr.bf16.mxu0 %v1650_v47 }
  0xba   :  { %1374 = vmatpush3.bf16.msra.mxu0 %v1491_v1 }
 0x150   :  { %v1254_v37 = vpop.f32.mrb[0].mxu0 }
 0x151   :  { %v1255_v39 = vpop.f32.mrb[1].mxu0 }
 0x152   :  { %v1256_v40 = vadd.f32 %v1255_v39, %v1254_v37  ;;  %v1257_v41 = vpop.f32.mrb[2].mxu0  ;;  %v1276_v42 = vpop.f32.mrb[0].mxu1 }
 0x153   :  { %v1258_v43 = vpop.f32.mrb[3].mxu0  ;;  %v1277_v45 = vpop.f32.mrb[1].mxu1 }
 0x154   :  { %v641_v44 = vadd.f32 %v1256_v40, %v1158_v38  ;;  %v1278_v46 = vadd.f32 %v1277_v45, %v1276_v42  ;;  %v1279_v48 = vpop.f32.mrb[2].mxu1 }
 0x155   :  { %v1280_v49 = vpop.f32.mrb[3].mxu1 }
 0x156   :  { %v681_v50 = vadd.f32 %v1278_v46, %v641_v44 }
 0x15a   :  { %v760_v51 = vpop.f32.mrb[4].mxu1 }
 0x15b   :  { %v1337_v52 = vpop.f32.mrb[5].mxu1 }
 0x15c   :  { %v763_v53 = vpop.f32.mrb[6].mxu1 }
 0x15d   :  { %v1338_v54 = vpop.f32.mrb[7].mxu1 }
 0x170   :  { %v1298_v55 = vpop.f32.mrb[4].mxu0 }
 0x171   :  { %v1299_v56 = vpop.f32.mrb[5].mxu0 }
 0x172   :  { %v1300_v57 = vadd.f32 %v1299_v56, %v1298_v55  ;;  %v1301_v58 = vpop.f32.mrb[6].mxu0 }
 0x173   :  { %v1302_v59 = vpop.f32.mrb[7].mxu0 }
 0x174   :  { %v721_v60 = vadd.f32 %v1300_v57, %v681_v50 }
 0x176   :  { %v761_v61 = vadd.f32 %v760_v51, %v721_v60 }
 0x178   :  { %v766_v62 = vmax.f32 %v761_v61, 0.0 }
 0x17a   :  { %v767_v63 = vpack.c.bf16 %v766_v62, %v766_v62 }
 0x17c   :  { %1356 = vmatmul.mubr.bf16.vlgmr.msra.gmra.mrb[8].mxu1 %v767_v63 }
 0x17d   :  { %1395 = vmatprep.mubr.msk.bf16.mxu1 %vm1651_vm0, %v1650_v47  ;;  %1380 = vmatpush3.bf16.msra.mxu1 %v1492_v2 }
 0x17e   :  { %1381 = vmatprep.subr.bf16.mxu1 %v1650_v47 }
 0x181   :  { %1382 = vmatpush3.bf16.msra.mxu1 %v1493_v3 }
 0x182   :  { %1383 = vmatprep.subr.bf16.mxu1 %v1650_v47 }
 0x185   :  { %1384 = vmatpush3.bf16.msra.mxu1 %v1494_v4 }
 0x186   :  { %1385 = vmatprep.subr.bf16.mxu1 %v1650_v47 }
 0x189   :  { %1386 = vmatpush3.bf16.msra.mxu1 %v1495_v5 }
 0x18a   :  { %1387 = vmatprep.subr.bf16.mxu1 %v1650_v47 }
 0x18d   :  { %1388 = vmatpush3.bf16.msra.mxu1 %v1496_v6 }
 0x18e   :  { %1389 = vmatprep.subr.bf16.mxu1 %v1650_v47 }
 0x191   :  { %1390 = vmatpush3.bf16.msra.mxu1 %v1497_v7 }
 0x192   :  { %1391 = vmatprep.subr.bf16.mxu1 %v1650_v47 }
 0x195   :  { %1392 = vmatpush3.bf16.msra.mxu1 %v1498_v16 }
 0x196   :  { %1393 = vmatprep.subr.bf16.mxu1 %v1650_v47  ;;  %v1227_v47 = vld [vmem:[%s1858_s8] ss:$0 sm:$0xff] }
 0x199   :  { %1394 = vmatpush3.bf16.msra.mxu1 %v1499_v17 }
 0x24f   :  { %v873_v9 = vpop.f32.mrb[8].mxu1 }
 0x250   :  { %v874_v10 = vadd.f32 %v1209_v8, %v873_v9  ;;  %v1357_v11 = vpop.f32.mrb[9].mxu1 }
 0x251   :  { %v876_v12 = vpop.f32.mrb[10].mxu1 }
 0x252   :  { %v879_v13 = vmax.f32 %v874_v10, 0.0  ;;  %v1358_v14 = vpop.f32.mrb[11].mxu1 }
 0x254   :  { %v880_v15 = vpack.c.bf16 %v879_v13, %v879_v13 }
 0x256   :  { %1376 = vmatmul.mubr.bf16.vlgmr.msra.gmra.mrb[8].mxu0 %v880_v15 }
 0x329   :  { %v986_v19 = vpop.f32.mrb[8].mxu0 }
 0x32a   :  { %v987_v20 = vadd.f32 %v1218_v18, %v986_v19  ;;  %v1377_v21 = vpop.f32.mrb[9].mxu0 }
 0x32b   :  { %v989_v22 = vpop.f32.mrb[10].mxu0 }
 0x32c   :  { %v992_v23 = vmax.f32 %v987_v20, 0.0  ;;  %v1378_v24 = vpop.f32.mrb[11].mxu0 }
 0x32e   :  { %v993_v25 = vpack.c.bf16 %v992_v23, %v992_v23 }
 0x330   :  { %1396 = vmatmul.mubr.bf16.vlgmr.msra.gmra.mrb[12].mxu1 %v993_v25 }
 0x403   :  { %v1099_v29 = vpop.f32.mrb[12].mxu1 }
 0x404   :  { %v1100_v30 = vadd.f32 %v1227_v47, %v1099_v29  ;;  %v1397_v33 = vpop.f32.mrb[13].mxu1 }
 0x405   :  { %v1102_v34 = vpop.f32.mrb[14].mxu1 }
 0x406   :  { %v1105_v35 = vpack.c.bf16 %v1100_v30, %v1100_v30  ;;  %v1398_v36 = vpop.f32.mrb[15].mxu1 }
 0x408   :  { %v1113_v37 = vrot.slane %v1105_v35, %v1112_v32 }
 0x40a   :  { %v1114_v38 = vcombine.high %v1113_v37, %v1113_v37  ;;  %v1121_v39 = vrot.slane %v1113_v37, %v1112_v32  ;;  %1236 = vst.sshfl [vmem:[#allocation11] sm:$0x1 pattern:$0x73625140] %v1113_v37 }
 0x40c   :  { %v1128_v40 = vrot.slane %v1114_v38, %v1112_v32  ;;  %v1129_v41 = vcombine.high %v1121_v39, %v1121_v39  ;;  %1237 = vst.sshfl [vmem:[#allocation11 + $0x1] sm:$0x1 pattern:$0x73625140] %v1114_v38 }
 0x40e   :  { %v1130_v42 = vcombine.high %v1128_v40, %v1128_v40  ;;  %1137 = vst [vmem:[#allocation11 + $0x2] sm:$0x1] %v1129_v41 }
 0x410   :  { %1138 = vst [vmem:[#allocation11 + $0x3] sm:$0x1] %v1130_v42 }
 0x411   :  { %1143 = vsyncadd [#allocation4], 48  ;;  %s1653_s6 = smov [#allocation11]  }
 0x412   :  { %s1144_s8 = sshll.u32 %s1653_s6, 4  ;;  %s1145_s8 = int_to_ptr.vmem [resolvable:$true] %s1144_s8 }
 0x413   :  { %s1610_s1 = scalar_lea.vmem %s1145_s8, 16  ;;  %s1614_s10 = scalar_lea.vmem %s1145_s8, 64 }
 0x414   :  { %p1611_p12 = scmp.ne.s32.totalorder %s1145_s8, %s1610_s1  ;;  %p1615_p13 = scmp.lt.s32.totalorder %s1145_s8, %s1145_s8 }
 0x415   :  { %p1616_p0 = scmp.lt.s32.totalorder %s1614_s10, %s1610_s1 }
 0x417   :  { %p1617_p1 = por %p1616_p0, %p1615_p13 }
 0x419   :  { %p1618_p2 = pnand %p1617_p1, %p1611_p12 }
 0x41b   :  { %1621 = shalt.err (!%p1618_p2)
}
 0x41c   :  { %s1622_s16 = scalar_lea.hbm %s1859_s9, 16 }
 0x41d   :  { %p1623_p3 = scmp.ne.s32.totalorder %s1859_s9, %s1622_s16  ;;  %p1626_p4 = scmp.lt.u32.totalorder %s1622_s16, %s1859_s9 }
 0x41f   :  { %p1628_p5 = pnand %p1626_p4, %p1623_p3 }
 0x421   :  { %1631 = shalt.err (!%p1628_p5)
}
 0x422   :  { %s1654_s21 = smov 16   ;;  %s1655_s22 = smov 1  }
 0x423   :  { %1150 = dma.vmem_to_hbm [thread:$0]  %s1145_s8, 16, %s1859_s9, [#allocation4], %s1654_s21, %s1654_s21, %s1655_s22  }
 0x424   :  { %1638 = dma.done.wait [#allocation4], 64  }
 0x425   :  { %1639 = vsyncadd [#allocation4], 4294967232 }
 0x426   :  { %1154 = vsyncpa [#allocation3], 1 }
 0x427   :  { %1155 = vsyncpa [#allocation6], 1 }
 0x428   :  { %1156 = vsyncpa [#allocation9], 1 }
 0x429   :  { %1157 = vsyncpa [#allocation4], 1 }

</bundles_post_ra>
